<compile_context>
chip_gen: v7x
topology: tpu7x:2x2x1
jax: 0.10.0
libtpu: 0.0.40
codegen_flags: <defaults>
</compile_context>

<pallas_src>
import functools

import jax
import jax.numpy as jnp
from jax.experimental import pallas as pl
from jax.experimental.pallas import tpu as pltpu

# TODO(synk): BLUR_FILTER is referenced but not defined in the provided spec;
# assuming the standard ProGAN/StyleGAN taps [1, 2, 1].
BLUR_FILTER = (1.0, 2.0, 1.0)


def _blur_kernel(x_ref, o_ref, *, w0: float, w1: float, w2: float, scale: float):
    # x_ref / o_ref: (TB, H, W)
    x = x_ref[...].astype(jnp.float32)

    # --- horizontal pass, reflection pad of 1 on the W (lane) axis ---
    # padded[:, :, -1] == x[:, :, 1]   and   padded[:, :, W] == x[:, :, W-2]
    left = jnp.concatenate([x[:, :, 1:2], x[:, :, :-1]], axis=2)     # x[.., j-1]
    right = jnp.concatenate([x[:, :, 1:], x[:, :, -2:-1]], axis=2)   # x[.., j+1]
    h = w0 * left + w1 * x + w2 * right

    # --- vertical pass, reflection pad of 1 on the H (sublane) axis ---
    up = jnp.concatenate([h[:, 1:2, :], h[:, :-1, :]], axis=1)       # h[.., i-1]
    down = jnp.concatenate([h[:, 1:, :], h[:, -2:-1, :]], axis=1)    # h[.., i+1]
    y = (w0 * up + w1 * h + w2 * down) * scale

    # Single dense full-block store (no masked partial slices).
    o_ref[...] = y.astype(o_ref.dtype)


def _pick_block_planes(n_planes: int, h: int, w: int, itemsize: int) -> int:
    """Largest divisor of n_planes whose block footprint stays at a few MiB."""
    # in + out blocks, double-buffered, plus f32 temporaries inside the kernel.
    bytes_per_plane = h * w * (2 * 2 * itemsize + 6 * 4)
    budget = 6 * 1024 * 1024
    cap = max(1, budget // max(bytes_per_plane, 1))
    best = 1
    for d in range(1, n_planes + 1):
        if n_planes % d == 0 and d <= cap:
            best = d
    return best


def blur(x: jax.Array, multiplier: int = 1) -> jax.Array:
    """Pallas equivalent of Blur.forward for NCHW input."""
    b, c, h, w = x.shape
    assert h >= 2 and w >= 2, "reflection pad of 1 requires spatial dims >= 2"

    s = float(sum(BLUR_FILTER))
    w0, w1, w2 = (float(v) / s for v in BLUR_FILTER)
    scale = float(multiplier) ** 2

    n = b * c
    xf = x.reshape(n, h, w)
    tb = _pick_block_planes(n, h, w, x.dtype.itemsize)

    out = pl.pallas_call(
        functools.partial(_blur_kernel, w0=w0, w1=w1, w2=w2, scale=scale),
        out_shape=jax.ShapeDtypeStruct((n, h, w), x.dtype),
        grid=(n // tb,),
        in_specs=[pl.BlockSpec((tb, h, w), lambda i: (i, 0, 0))],
        out_specs=pl.BlockSpec((tb, h, w), lambda i: (i, 0, 0)),
        compiler_params=pltpu.CompilerParams(
            dimension_semantics=("parallel",)),
    )(xf)

    return out.reshape(b, c, h, w)


def _reference(x: jax.Array, multiplier: int = 1) -> jax.Array:
    """Pure-JAX reference mirroring the torch Blur module line by line."""
    b, c, h, w = x.shape
    f = jnp.asarray(BLUR_FILTER, dtype=jnp.float32)
    filt = f[:, None] * f[None, :]
    filt = filt / filt.sum() * (float(multiplier) ** 2)
    xp = jnp.pad(x.astype(jnp.float32), ((0, 0), (0, 0), (1, 1), (1, 1)),
                 mode="reflect")
    weights = jnp.broadcast_to(filt[None, None], (c, 1, 3, 3))
    out = jax.lax.conv_general_dilated(
        xp, weights, window_strides=(1, 1), padding="VALID",
        dimension_numbers=("NCHW", "OIHW", "NCHW"),
        feature_group_count=c)
    return out.astype(x.dtype)


if __name__ == "__main__":
    key = jax.random.PRNGKey(0)
    B, C, H, W = 2, 4, 16, 16
    x = jax.random.normal(key, (B, C, H, W), dtype=jnp.float32)

    out = blur(x)
    out = jax.block_until_ready(out)

    ref = _reference(x)
    assert out.shape == (B, C, H, W)
    assert jnp.allclose(out, ref, atol=1e-5, rtol=1e-5)

    print("KERNEL_OK")
</pallas_src>

<mosaic_0001>
module attributes {stable_mosaic.version = 11 : i64} {
  func.func @_blur_kernel(%arg0: i32, %arg1: memref<8x16x16xf32, #tpu.memory_space<vmem>>, %arg2: memref<8x16x16xf32, #tpu.memory_space<vmem>>) attributes {dimension_semantics = [#tpu.dimension_semantics<parallel>], iteration_bounds = array<i64: 1>, scalar_prefetch = 0 : i64, scratch_operands = 0 : i64, tpu.core_type = #tpu.core_type<tc>, window_params = [{transform_indices = @transform_0, window_bounds = array<i64: 8, 16, 16>}, {transform_indices = @transform_1, window_bounds = array<i64: 8, 16, 16>}]} {
    %c0 = arith.constant 0 : index
    %c0_0 = arith.constant 0 : index
    %c0_1 = arith.constant 0 : index
    %0 = vector.load %arg1[%c0, %c0_0, %c0_1] : memref<8x16x16xf32, #tpu.memory_space<vmem>>, vector<8x16x16xf32>
    %1 = vector.extract_strided_slice %0 {offsets = [0, 0, 1], sizes = [8, 16, 1], strides = [1, 1, 1]} : vector<8x16x16xf32> to vector<8x16x1xf32>
    %2 = vector.extract_strided_slice %0 {offsets = [0, 0, 0], sizes = [8, 16, 15], strides = [1, 1, 1]} : vector<8x16x16xf32> to vector<8x16x15xf32>
    %3 = tpu.concatenate %1, %2 in 2 : vector<8x16x1xf32>, vector<8x16x15xf32> -> vector<8x16x16xf32>
    %4 = vector.extract_strided_slice %0 {offsets = [0, 0, 1], sizes = [8, 16, 15], strides = [1, 1, 1]} : vector<8x16x16xf32> to vector<8x16x15xf32>
    %5 = vector.extract_strided_slice %0 {offsets = [0, 0, 14], sizes = [8, 16, 1], strides = [1, 1, 1]} : vector<8x16x16xf32> to vector<8x16x1xf32>
    %6 = tpu.concatenate %4, %5 in 2 : vector<8x16x15xf32>, vector<8x16x1xf32> -> vector<8x16x16xf32>
    %cst = arith.constant 2.500000e-01 : f32
    %7 = vector.broadcast %cst : f32 to vector<8x16x16xf32>
    %8 = arith.mulf %7, %3 : vector<8x16x16xf32>
    %cst_2 = arith.constant 5.000000e-01 : f32
    %9 = vector.broadcast %cst_2 : f32 to vector<8x16x16xf32>
    %10 = arith.mulf %9, %0 : vector<8x16x16xf32>
    %11 = arith.addf %8, %10 : vector<8x16x16xf32>
    %cst_3 = arith.constant 2.500000e-01 : f32
    %12 = vector.broadcast %cst_3 : f32 to vector<8x16x16xf32>
    %13 = arith.mulf %12, %6 : vector<8x16x16xf32>
    %14 = arith.addf %11, %13 : vector<8x16x16xf32>
    %15 = vector.extract_strided_slice %14 {offsets = [0, 1, 0], sizes = [8, 1, 16], strides = [1, 1, 1]} : vector<8x16x16xf32> to vector<8x1x16xf32>
    %16 = vector.extract_strided_slice %14 {offsets = [0, 0, 0], sizes = [8, 15, 16], strides = [1, 1, 1]} : vector<8x16x16xf32> to vector<8x15x16xf32>
    %17 = tpu.concatenate %15, %16 in 1 : vector<8x1x16xf32>, vector<8x15x16xf32> -> vector<8x16x16xf32>
    %18 = vector.extract_strided_slice %14 {offsets = [0, 1, 0], sizes = [8, 15, 16], strides = [1, 1, 1]} : vector<8x16x16xf32> to vector<8x15x16xf32>
    %19 = vector.extract_strided_slice %14 {offsets = [0, 14, 0], sizes = [8, 1, 16], strides = [1, 1, 1]} : vector<8x16x16xf32> to vector<8x1x16xf32>
    %20 = tpu.concatenate %18, %19 in 1 : vector<8x15x16xf32>, vector<8x1x16xf32> -> vector<8x16x16xf32>
    %cst_4 = arith.constant 2.500000e-01 : f32
    %21 = vector.broadcast %cst_4 : f32 to vector<8x16x16xf32>
    %22 = arith.mulf %21, %17 : vector<8x16x16xf32>
    %cst_5 = arith.constant 5.000000e-01 : f32
    %23 = vector.broadcast %cst_5 : f32 to vector<8x16x16xf32>
    %24 = arith.mulf %23, %14 : vector<8x16x16xf32>
    %25 = arith.addf %22, %24 : vector<8x16x16xf32>
    %cst_6 = arith.constant 2.500000e-01 : f32
    %26 = vector.broadcast %cst_6 : f32 to vector<8x16x16xf32>
    %27 = arith.mulf %26, %20 : vector<8x16x16xf32>
    %28 = arith.addf %25, %27 : vector<8x16x16xf32>
    %cst_7 = arith.constant 1.000000e+00 : f32
    %29 = vector.broadcast %cst_7 : f32 to vector<8x16x16xf32>
    %30 = arith.mulf %28, %29 : vector<8x16x16xf32>
    %c0_8 = arith.constant 0 : index
    %c0_9 = arith.constant 0 : index
    %c0_10 = arith.constant 0 : index
    %31 = vector.load %arg2[%c0_8, %c0_9, %c0_10] : memref<8x16x16xf32, #tpu.memory_space<vmem>>, vector<8x16x16xf32>
    tpu.vector_store %arg2[%c0_8, %c0_9, %c0_10], %30 {strides = array<i32>} : memref<8x16x16xf32, #tpu.memory_space<vmem>>, vector<8x16x16xf32>,
    return
  }
  func.func @transform_0(%arg0: i32) -> (i32, i32, i32) {
    %c0_i32 = arith.constant 0 : i32
    %c0_i32_0 = arith.constant 0 : i32
    %c0_i32_1 = arith.constant 0 : i32
    return %arg0, %c0_i32, %c0_i32_0 : i32, i32, i32
  }
  func.func @transform_1(%arg0: i32) -> (i32, i32, i32) {
    %c0_i32 = arith.constant 0 : i32
    %c0_i32_0 = arith.constant 0 : i32
    %c0_i32_1 = arith.constant 0 : i32
    return %arg0, %c0_i32, %c0_i32_0 : i32, i32, i32
  }
}

</mosaic_0001>

<bundles_post_ra>
// kernel: tpu_custom_call.1
= control target key start
LH: loop header
LB: loop body
LE: loop exit
PB: predicated region body
PF: predicated region fallthrough
CT: control target
= control target key end

     0   :  { %6 = vsyncpa [#allocation3], 0  ;;  %s817_s0 = inlined_call_operand.hbm [shape: f32[8,16,16], index: 0, kind: input, shape index: {}]   ;;  %s818_s1 = inlined_call_operand.hbm [shape: f32[8,16,16], index: 1, kind: output, shape index: {}]  }
   0x1   :  { %7 = vsyncpa [#allocation4], 0  ;;  %s563_s6 = smov [#allocation2]   ;;  %s515_s10 = scalar_lea.hbm %s817_s0, 2048 }
   0x2   :  { %s13_s7 = sshll.u32 %s563_s6, 4  ;;  %p516_p0 = scmp.ne.s32.totalorder %s817_s0, %s515_s10  ;;  %s14_s7 = int_to_ptr.vmem [resolvable:$true] %s13_s7 }
   0x3   :  { %p519_p1 = scmp.lt.u32.totalorder %s515_s10, %s817_s0 }
   0x5   :  { %p521_p2 = pnand %p519_p1, %p516_p0 }
   0x7   :  { %524 = shalt.err (!%p521_p2)
}
   0x8   :  { %s525_s15 = scalar_lea.vmem %s14_s7, 2048  ;;  %p530_p4 = scmp.lt.s32.totalorder %s14_s7, %s14_s7 }
   0x9   :  { %p526_p3 = scmp.ne.s32.totalorder %s14_s7, %s525_s15  ;;  %p531_p5 = scmp.lt.s32.totalorder %s525_s15, %s525_s15 }
   0xb   :  { %p532_p6 = por %p531_p5, %p530_p4 }
   0xd   :  { %p533_p7 = pnand %p532_p6, %p526_p3 }
   0xf   :  { %536 = shalt.err (!%p533_p7)
}
  0x10   :  { %s564_s16 = smov 128   ;;  %s565_s17 = smov 8  }
  0x11   :  { %19 = dma.hbm_to_vmem [thread:$0]  %s817_s0, 2048, %s14_s7, [#allocation3], %s564_s16, %s564_s16, %s565_s17  }
  0x12   :  { %559 = dma.done.wait [#allocation3], 2048  }
  0x13   :  { %560 = vsyncadd [#allocation3], 4294965248  ;;  %v594_v0 = vld [vmem:[#allocation2 + $0x10] sm:$0xff]  ;;  %v596_v1 = vld [vmem:[#allocation2] sm:$0xff]  ;;  %s566_s20 = smov 127   ;;  %s567_s0 = smov 1  }
  0x14   :  { %59 = vrot.lane.b32.xlu1 %v594_v0, %s566_s20  ;;  %55 = vrot.lane.b32.xlu0 %v596_v1, %s566_s20  ;;  %v600_v2 = vld [vmem:[#allocation2 + $0x18] sm:$0xff]  ;;  %v602_v3 = vld [vmem:[#allocation2 + $0x8] sm:$0xff]  ;;  %v27_v5 = vld [vmem:[#allocation2 + $0x20] sm:$0xff]  ;;  %vm151_vm0 = vcmask 7168   ;;  %vm168_vm1 = vcmask 121856   ;;  %v203_v32 = vmul.f32 0.5, %v594_v0 }
  0x15   :  { %v28_v4 = vld [vmem:[#allocation2 + $0x28] sm:$0xff]  ;;  %v30_v6 = vld [vmem:[#allocation2 + $0x38] sm:$0xff]  ;;  %v29_v7 = vld [vmem:[#allocation2 + $0x30] sm:$0xff]  ;;  %v201_v33 = vmul.f32 0.5, %v596_v1  ;;  %v204_v34 = vmul.f32 0.5, %v600_v2  ;;  %v202_v35 = vmul.f32 0.5, %v602_v3 }
  0x16   :  { %v606_v8 = vld [vmem:[#allocation2 + $0x48] sm:$0xff]  ;;  %v608_v9 = vld [vmem:[#allocation2 + $0x40] sm:$0xff]  ;;  %v612_v10 = vld [vmem:[#allocation2 + $0x58] sm:$0xff]  ;;  %v662_v36 = vmul.f32 0.5, %v28_v4  ;;  %v664_v37 = vmul.f32 0.5, %v27_v5  ;;  %v666_v38 = vmul.f32 0.5, %v30_v6 }
  0x17   :  { %v614_v11 = vld [vmem:[#allocation2 + $0x50] sm:$0xff]  ;;  %v36_v12 = vld [vmem:[#allocation2 + $0x68] sm:$0xff]  ;;  %v35_v13 = vld [vmem:[#allocation2 + $0x60] sm:$0xff]  ;;  %v668_v39 = vmul.f32 0.5, %v29_v7  ;;  %v675_v46 = vmul.f32 0.5, %v606_v8  ;;  %v678_v47 = vmul.f32 0.5, %v608_v9 }
  0x18   :  { %61 = vrot.lane.b32.xlu1 %v600_v2, %s566_s20  ;;  %57 = vrot.lane.b32.xlu0 %v602_v3, %s566_s20  ;;  %v618_v14 = vld [vmem:[#allocation2 + $0x78] sm:$0xff]  ;;  %v620_v15 = vld [vmem:[#allocation2 + $0x70] sm:$0xff]  ;;  %v681_v50 = vmul.f32 0.5, %v612_v10  ;;  %v684_v51 = vmul.f32 0.5, %v614_v11  ;;  %v686_v52 = vmul.f32 0.5, %v36_v12  ;;  %v688_v53 = vmul.f32 0.5, %v35_v13 }
  0x19   :  { %vm346_vm2 = vcmask 1046528   ;;  %vm297_vm3 = vcmask 1040384   ;;  %vm475_vm4 = vcmask 130048   ;;  %s568_s21 = smov [#allocation5]  }
  0x1a   :  { %s497_s22 = sshll.u32 %s568_s21, 4  ;;  %s498_s22 = int_to_ptr.vmem [resolvable:$true] %s497_s22 }
  0x1b   :  { %s537_s23 = scalar_lea.vmem %s498_s22, 2048  ;;  %p542_p9 = scmp.lt.s32.totalorder %s498_s22, %s498_s22 }
  0x1c   :  { %65 = vrot.lane.b32.xlu1 %v28_v4, %s566_s20  ;;  %63 = vrot.lane.b32.xlu0 %v27_v5, %s566_s20  ;;  %p538_p8 = scmp.ne.s32.totalorder %s498_s22, %s537_s23  ;;  %p543_p10 = scmp.lt.s32.totalorder %s537_s23, %s537_s23 }
  0x1e   :  { %p544_p11 = por %p543_p10, %p542_p9 }
  0x20   :  { %69 = vrot.lane.b32.xlu1 %v30_v6, %s566_s20  ;;  %67 = vrot.lane.b32.xlu0 %v29_v7, %s566_s20  ;;  %p545_p12 = pnand %p544_p11, %p538_p8 }
  0x24   :  { %73 = vrot.lane.b32.xlu1 %v606_v8, %s566_s20  ;;  %71 = vrot.lane.b32.xlu0 %v608_v9, %s566_s20 }
  0x28   :  { %77 = vrot.lane.b32.xlu1 %v612_v10, %s566_s20  ;;  %75 = vrot.lane.b32.xlu0 %v614_v11, %s566_s20 }
  0x2c   :  { %81 = vrot.lane.b32.xlu1 %v36_v12, %s566_s20  ;;  %79 = vrot.lane.b32.xlu0 %v35_v13, %s566_s20 }
  0x30   :  { %85 = vrot.lane.b32.xlu1 %v618_v14, %s566_s20  ;;  %83 = vrot.lane.b32.xlu0 %v620_v15, %s566_s20 }
  0x34   :  { %105 = vrot.lane.b32.xlu1 %v602_v3, %s567_s0  ;;  %103 = vrot.lane.b32.xlu0 %v596_v1, %s567_s0 }
  0x38   :  { %109 = vrot.lane.b32.xlu1 %v600_v2, %s567_s0  ;;  %107 = vrot.lane.b32.xlu0 %v594_v0, %s567_s0 }
  0x3c   :  { %113 = vrot.lane.b32.xlu1 %v28_v4, %s567_s0  ;;  %111 = vrot.lane.b32.xlu0 %v27_v5, %s567_s0 }
  0x40   :  { %117 = vrot.lane.b32.xlu1 %v30_v6, %s567_s0  ;;  %115 = vrot.lane.b32.xlu0 %v29_v7, %s567_s0 }
  0x44   :  { %121 = vrot.lane.b32.xlu1 %v606_v8, %s567_s0  ;;  %119 = vrot.lane.b32.xlu0 %v608_v9, %s567_s0 }
  0x48   :  { %125 = vrot.lane.b32.xlu1 %v612_v10, %s567_s0  ;;  %123 = vrot.lane.b32.xlu0 %v614_v11, %s567_s0 }
  0x4c   :  { %129 = vrot.lane.b32.xlu1 %v36_v12, %s567_s0  ;;  %127 = vrot.lane.b32.xlu0 %v35_v13, %s567_s0 }
  0x50   :  { %133 = vrot.lane.b32.xlu1 %v618_v14, %s567_s0  ;;  %131 = vrot.lane.b32.xlu0 %v620_v15, %s567_s0 }
  0x86   :  { %v60_v16 = vpop.permute.xlu1 %59  ;;  %v56_v17 = vpop.permute.xlu0 %55 }
  0x8a   :  { %v62_v18 = vpop.permute.xlu1 %61  ;;  %v58_v19 = vpop.permute.xlu0 %57 }
  0x8e   :  { %v634_v20 = vpop.permute.xlu1 %65  ;;  %v636_v21 = vpop.permute.xlu0 %63 }
  0x92   :  { %v638_v22 = vpop.permute.xlu1 %69  ;;  %v640_v23 = vpop.permute.xlu0 %67 }
  0x96   :  { %v642_v24 = vpop.permute.xlu1 %73  ;;  %v644_v25 = vpop.permute.xlu0 %71 }
  0x9a   :  { %v646_v26 = vpop.permute.xlu1 %77  ;;  %v648_v27 = vpop.permute.xlu0 %75 }
  0x9e   :  { %v650_v28 = vpop.permute.xlu1 %81  ;;  %v652_v29 = vpop.permute.xlu0 %79 }
  0xa2   :  { %v654_v30 = vpop.permute.xlu1 %85  ;;  %v656_v31 = vpop.permute.xlu0 %83 }
  0xa6   :  { %v106_v40 = vpop.permute.xlu1 %105  ;;  %v104_v41 = vpop.permute.xlu0 %103 }
  0xa7   :  { %v153_v42 = vsel %vm151_vm0, %v58_v19, %v106_v40  ;;  %v170_v43 = vsel %vm168_vm1, %v58_v19, %v106_v40  ;;  %v152_v44 = vsel %vm151_vm0, %v56_v17, %v104_v41  ;;  %v169_v45 = vsel %vm168_vm1, %v56_v17, %v104_v41 }
  0xa8   :  { %v186_v48 = vmul.f32 0.25, %v153_v42  ;;  %v185_v49 = vmul.f32 0.25, %v152_v44  ;;  %v234_v55 = vmul.f32 0.25, %v170_v43  ;;  %v233_v57 = vmul.f32 0.25, %v169_v45 }
  0xaa   :  { %v218_v54 = vadd.f32 %v202_v35, %v186_v48  ;;  %v217_v56 = vadd.f32 %v201_v33, %v185_v49  ;;  %v110_v58 = vpop.permute.xlu1 %109  ;;  %v108_v59 = vpop.permute.xlu0 %107 }
  0xab   :  { %v155_v60 = vsel %vm151_vm0, %v62_v18, %v110_v58  ;;  %v172_v61 = vsel %vm168_vm1, %v62_v18, %v110_v58  ;;  %v154_v62 = vsel %vm151_vm0, %v60_v16, %v108_v59  ;;  %v171_v63 = vsel %vm168_vm1, %v60_v16, %v108_v59 }
  0xac   :  { %v250_v0 = vadd.f32 %v234_v55, %v218_v54  ;;  %v249_v1 = vadd.f32 %v233_v57, %v217_v56  ;;  %v188_v2 = vmul.f32 0.25, %v155_v60  ;;  %v236_v3 = vmul.f32 0.25, %v172_v61 }
  0xad   :  { %v187_v4 = vmul.f32 0.25, %v154_v62  ;;  %v235_v8 = vmul.f32 0.25, %v171_v63 }
  0xae   :  { %v299_v5 = vrot.slane %v250_v0, 7  ;;  %v347_v6 = vrot.slane %v250_v0, 1  ;;  %v273_v7 = vrot.slane %v249_v1, 1  ;;  %v114_v9 = vpop.permute.xlu1 %113  ;;  %v412_v10 = vmul.f32 0.5, %v250_v0  ;;  %v112_v33 = vpop.permute.xlu0 %111 }
  0xaf   :  { %v298_v11 = vrot.slane %v249_v1, 7  ;;  %v220_v12 = vadd.f32 %v204_v34, %v188_v2  ;;  %v219_v13 = vadd.f32 %v203_v32, %v187_v4  ;;  %v157_v18 = vsel %vm151_vm0, %v634_v20, %v114_v9 }
  0xb0   :  { %v387_v17 = vsel %vm346_vm2, %v347_v6, %v299_v5  ;;  %v348_v16 = vsel %vm346_vm2, %v273_v7, %v347_v6  ;;  %v174_v19 = vsel %vm168_vm1, %v634_v20, %v114_v9  ;;  %v411_v42 = vmul.f32 0.5, %v249_v1 }
  0xb1   :  { %v444_v35 = vmul.f32 0.25, %v387_v17  ;;  %v300_v40 = vsel %vm297_vm3, %v298_v11, %v299_v5  ;;  %v338_v41 = vsel %vm297_vm3, %v273_v7, %v298_v11  ;;  %v252_v32 = vadd.f32 %v236_v3, %v220_v12 }
  0xb2   :  { %v395_v43 = vmul.f32 0.25, %v338_v41  ;;  %v396_v34 = vmul.f32 0.25, %v300_v40  ;;  %v251_v44 = vadd.f32 %v235_v8, %v219_v13  ;;  %v443_v45 = vmul.f32 0.25, %v348_v16  ;;  %v118_v62 = vpop.permute.xlu1 %117  ;;  %v116_v7 = vpop.permute.xlu0 %115 }
  0xb3   :  { %v190_v48 = vmul.f32 0.25, %v157_v18  ;;  %v238_v49 = vmul.f32 0.25, %v174_v19  ;;  %v156_v54 = vsel %vm151_vm0, %v636_v21, %v112_v33  ;;  %v302_v20 = vrot.slane %v252_v32, 7 }
  0xb4   :  { %v427_v55 = vadd.f32 %v411_v42, %v395_v43  ;;  %v428_v56 = vadd.f32 %v412_v10, %v396_v34  ;;  %v349_v57 = vrot.slane %v252_v32, 1  ;;  %v414_v58 = vmul.f32 0.5, %v252_v32 }
  0xb5   :  { %v274_v59 = vrot.slane %v251_v44, 1  ;;  %v301_v60 = vrot.slane %v251_v44, 7  ;;  %v173_v61 = vsel %vm168_vm1, %v636_v21, %v112_v33  ;;  %v222_v2 = vadd.f32 %v662_v36, %v190_v48 }
  0xb6   :  { %v459_v63 = vadd.f32 %v443_v45, %v427_v55  ;;  %v460_v0 = vadd.f32 %v444_v35, %v428_v56  ;;  %v388_v1 = vsel %vm346_vm2, %v349_v57, %v302_v20  ;;  %v413_v6 = vmul.f32 0.5, %v251_v44  ;;  %v122_v42 = vpop.permute.xlu1 %121 }
  0xb7   :  { %v303_v3 = vsel %vm297_vm3, %v301_v60, %v302_v20  ;;  %v339_v4 = vsel %vm297_vm3, %v274_v59, %v301_v60  ;;  %v350_v5 = vsel %vm346_vm2, %v274_v59, %v349_v57  ;;  %v446_v21 = vmul.f32 0.25, %v388_v1 }
  0xb8   :  { %476 = vst.msk [vmem:[#allocation5] sm:$0xff] %vm475_vm4, %v459_v63  ;;  %477 = vst.msk [vmem:[#allocation5 + $0x8] sm:$0xff] %vm475_vm4, %v460_v0  ;;  %v397_v8 = vmul.f32 0.25, %v339_v4  ;;  %v398_v9 = vmul.f32 0.25, %v303_v3  ;;  %v254_v10 = vadd.f32 %v238_v49, %v222_v2  ;;  %v445_v11 = vmul.f32 0.25, %v350_v5 }
  0xb9   :  { %v189_v12 = vmul.f32 0.25, %v156_v54  ;;  %v159_v36 = vsel %vm151_vm0, %v638_v22, %v118_v62  ;;  %v176_v13 = vsel %vm168_vm1, %v638_v22, %v118_v62  ;;  %v237_v40 = vmul.f32 0.25, %v173_v61  ;;  %v120_v54 = vpop.permute.xlu0 %119 }
  0xba   :  { %v429_v17 = vadd.f32 %v413_v6, %v397_v8  ;;  %v430_v16 = vadd.f32 %v414_v58, %v398_v9  ;;  %v305_v18 = vrot.slane %v254_v10, 7  ;;  %v351_v19 = vrot.slane %v254_v10, 1 }
  0xbb   :  { %v416_v33 = vmul.f32 0.5, %v254_v10  ;;  %v221_v35 = vadd.f32 %v664_v37, %v189_v12  ;;  %v192_v41 = vmul.f32 0.25, %v159_v36  ;;  %v158_v44 = vsel %vm151_vm0, %v640_v23, %v116_v7 }
  0xbc   :  { %v461_v43 = vadd.f32 %v445_v11, %v429_v17  ;;  %v462_v34 = vadd.f32 %v446_v21, %v430_v16  ;;  %v389_v32 = vsel %vm346_vm2, %v351_v19, %v305_v18  ;;  %v240_v48 = vmul.f32 0.25, %v176_v13 }
  0xbd   :  { %v253_v45 = vadd.f32 %v237_v40, %v221_v35  ;;  %v224_v22 = vadd.f32 %v666_v38, %v192_v41  ;;  %v175_v49 = vsel %vm168_vm1, %v640_v23, %v116_v7  ;;  %v448_v37 = vmul.f32 0.25, %v389_v32  ;;  %v126_v40 = vpop.permute.xlu1 %125 }
  0xbe   :  { %478 = vst.msk [vmem:[#allocation5 + $0x10] sm:$0xff] %vm475_vm4, %v461_v43  ;;  %479 = vst.msk [vmem:[#allocation5 + $0x18] sm:$0xff] %vm475_vm4, %v462_v34  ;;  %v191_v55 = vmul.f32 0.25, %v158_v44  ;;  %v239_v56 = vmul.f32 0.25, %v175_v49  ;;  %v161_v20 = vsel %vm151_vm0, %v642_v24, %v122_v42  ;;  %v178_v38 = vsel %vm168_vm1, %v642_v24, %v122_v42 }
  0xbf   :  { %v275_v57 = vrot.slane %v253_v45, 1  ;;  %v304_v58 = vrot.slane %v253_v45, 7  ;;  %v256_v59 = vadd.f32 %v240_v48, %v224_v22  ;;  %v415_v60 = vmul.f32 0.5, %v253_v45 }
  0xc0   :  { %v223_v23 = vadd.f32 %v668_v39, %v191_v55  ;;  %v194_v61 = vmul.f32 0.25, %v161_v20  ;;  %v160_v62 = vsel %vm151_vm0, %v644_v25, %v120_v54  ;;  %v242_v6 = vmul.f32 0.25, %v178_v38  ;;  %v124_v55 = vpop.permute.xlu0 %123 }
  0xc1   :  { %v306_v63 = vsel %vm297_vm3, %v304_v58, %v305_v18  ;;  %v340_v0 = vsel %vm297_vm3, %v275_v57, %v304_v58  ;;  %v352_v1 = vsel %vm346_vm2, %v275_v57, %v351_v19  ;;  %v308_v2 = vrot.slane %v256_v59, 7 }
  0xc2   :  { %v399_v3 = vmul.f32 0.25, %v340_v0  ;;  %v400_v4 = vmul.f32 0.25, %v306_v63  ;;  %v353_v5 = vrot.slane %v256_v59, 1  ;;  %v447_v7 = vmul.f32 0.25, %v352_v1 }
  0xc3   :  { %v255_v24 = vadd.f32 %v239_v56, %v223_v23  ;;  %v226_v21 = vadd.f32 %v675_v46, %v194_v61  ;;  %v177_v39 = vsel %vm168_vm1, %v644_v25, %v120_v54  ;;  %v193_v11 = vmul.f32 0.25, %v160_v62  ;;  %v130_v61 = vpop.permute.xlu1 %129 }
  0xc4   :  { %v431_v8 = vadd.f32 %v415_v60, %v399_v3  ;;  %v432_v9 = vadd.f32 %v416_v33, %v400_v4  ;;  %v390_v10 = vsel %vm346_vm2, %v353_v5, %v308_v2  ;;  %v418_v12 = vmul.f32 0.5, %v256_v59 }
  0xc5   :  { %v450_v36 = vmul.f32 0.25, %v390_v10  ;;  %v276_v13 = vrot.slane %v255_v24, 1  ;;  %v307_v17 = vrot.slane %v255_v24, 7  ;;  %v258_v19 = vadd.f32 %v242_v6, %v226_v21 }
  0xc6   :  { %v463_v16 = vadd.f32 %v447_v7, %v431_v8  ;;  %v464_v18 = vadd.f32 %v448_v37, %v432_v9  ;;  %v225_v35 = vadd.f32 %v678_v47, %v193_v11  ;;  %v241_v33 = vmul.f32 0.25, %v177_v39  ;;  %v128_v9 = vpop.permute.xlu0 %127 }
  0xc7   :  { %v309_v46 = vsel %vm297_vm3, %v307_v17, %v308_v2  ;;  %v341_v41 = vsel %vm297_vm3, %v276_v13, %v307_v17  ;;  %v354_v25 = vsel %vm346_vm2, %v276_v13, %v353_v5  ;;  %v417_v34 = vmul.f32 0.5, %v255_v24 }
  0xc8   :  { %480 = vst.msk [vmem:[#allocation5 + $0x20] sm:$0xff] %vm475_vm4, %v463_v16  ;;  %481 = vst.msk [vmem:[#allocation5 + $0x28] sm:$0xff] %vm475_vm4, %v464_v18  ;;  %v401_v42 = vmul.f32 0.25, %v341_v41  ;;  %v402_v43 = vmul.f32 0.25, %v309_v46  ;;  %v311_v32 = vrot.slane %v258_v19, 7  ;;  %v449_v44 = vmul.f32 0.25, %v354_v25  ;;  %v134_v18 = vpop.permute.xlu1 %133 }
  0xc9   :  { %v355_v45 = vrot.slane %v258_v19, 1  ;;  %v257_v22 = vadd.f32 %v241_v33, %v225_v35  ;;  %v163_v47 = vsel %vm151_vm0, %v646_v26, %v126_v40  ;;  %v180_v54 = vsel %vm168_vm1, %v646_v26, %v126_v40 }
  0xca   :  { %v433_v48 = vadd.f32 %v417_v34, %v401_v42  ;;  %v434_v49 = vadd.f32 %v418_v12, %v402_v43  ;;  %v196_v37 = vmul.f32 0.25, %v163_v47  ;;  %v420_v20 = vmul.f32 0.5, %v258_v19 }
  0xcb   :  { %v391_v56 = vsel %vm346_vm2, %v355_v45, %v311_v32  ;;  %v277_v57 = vrot.slane %v257_v22, 1  ;;  %v310_v58 = vrot.slane %v257_v22, 7  ;;  %v419_v60 = vmul.f32 0.5, %v257_v22 }
  0xcc   :  { %v465_v59 = vadd.f32 %v449_v44, %v433_v48  ;;  %v466_v38 = vadd.f32 %v450_v36, %v434_v49  ;;  %v228_v23 = vadd.f32 %v681_v50, %v196_v37  ;;  %v244_v26 = vmul.f32 0.25, %v180_v54  ;;  %v132_v48 = vpop.permute.xlu0 %131 }
  0xcd   :  { %v312_v62 = vsel %vm297_vm3, %v310_v58, %v311_v32  ;;  %v342_v63 = vsel %vm297_vm3, %v277_v57, %v310_v58  ;;  %v356_v0 = vsel %vm346_vm2, %v277_v57, %v355_v45  ;;  %v452_v1 = vmul.f32 0.25, %v391_v56 }
  0xce   :  { %482 = vst.msk [vmem:[#allocation5 + $0x30] sm:$0xff] %vm475_vm4, %v465_v59  ;;  %483 = vst.msk [vmem:[#allocation5 + $0x38] sm:$0xff] %vm475_vm4, %v466_v38  ;;  %v403_v2 = vmul.f32 0.25, %v342_v63  ;;  %v404_v3 = vmul.f32 0.25, %v312_v62  ;;  %v162_v4 = vsel %vm151_vm0, %v648_v27, %v124_v55  ;;  %v260_v5 = vadd.f32 %v244_v26, %v228_v23 }
  0xcf   :  { %v179_v50 = vsel %vm168_vm1, %v648_v27, %v124_v55  ;;  %v195_v6 = vmul.f32 0.25, %v162_v4  ;;  %v165_v7 = vsel %vm151_vm0, %v650_v28, %v130_v61  ;;  %v451_v39 = vmul.f32 0.25, %v356_v0 }
  0xd0   :  { %v435_v24 = vadd.f32 %v419_v60, %v403_v2  ;;  %v436_v21 = vadd.f32 %v420_v20, %v404_v3  ;;  %v243_v8 = vmul.f32 0.25, %v179_v50  ;;  %v314_v10 = vrot.slane %v260_v5, 7 }
  0xd1   :  { %v357_v11 = vrot.slane %v260_v5, 1  ;;  %v227_v12 = vadd.f32 %v684_v51, %v195_v6  ;;  %v182_v36 = vsel %vm168_vm1, %v650_v28, %v130_v61  ;;  %v216_v13 = vmul.f32 0.5, %v618_v14 }
  0xd2   :  { %v467_v17 = vadd.f32 %v451_v39, %v435_v24  ;;  %v468_v27 = vadd.f32 %v452_v1, %v436_v21  ;;  %v198_v16 = vmul.f32 0.25, %v165_v7  ;;  %v422_v35 = vmul.f32 0.5, %v260_v5 }
  0xd3   :  { %v392_v19 = vsel %vm346_vm2, %v357_v11, %v314_v10  ;;  %v259_v40 = vadd.f32 %v243_v8, %v227_v12  ;;  %v164_v46 = vsel %vm151_vm0, %v652_v29, %v128_v9  ;;  %v246_v28 = vmul.f32 0.25, %v182_v36 }
  0xd4   :  { %484 = vst.msk [vmem:[#allocation5 + $0x40] sm:$0xff] %vm475_vm4, %v467_v17  ;;  %485 = vst.msk [vmem:[#allocation5 + $0x48] sm:$0xff] %vm475_vm4, %v468_v27  ;;  %v230_v51 = vadd.f32 %v686_v52, %v198_v16  ;;  %v181_v14 = vsel %vm168_vm1, %v652_v29, %v128_v9  ;;  %v197_v41 = vmul.f32 0.25, %v164_v46  ;;  %v454_v25 = vmul.f32 0.25, %v392_v19 }
  0xd5   :  { %v278_v33 = vrot.slane %v259_v40, 1  ;;  %v313_v42 = vrot.slane %v259_v40, 7  ;;  %v167_v43 = vsel %vm151_vm0, %v654_v30, %v134_v18  ;;  %v184_v44 = vsel %vm168_vm1, %v654_v30, %v134_v18 }
  0xd6   :  { %v262_v34 = vadd.f32 %v246_v28, %v230_v51  ;;  %v229_v32 = vadd.f32 %v688_v53, %v197_v41  ;;  %v200_v45 = vmul.f32 0.25, %v167_v43  ;;  %v245_v47 = vmul.f32 0.25, %v181_v14 }
  0xd7   :  { %v315_v52 = vsel %vm297_vm3, %v313_v42, %v314_v10  ;;  %v343_v22 = vsel %vm297_vm3, %v278_v33, %v313_v42  ;;  %v358_v29 = vsel %vm346_vm2, %v278_v33, %v357_v11  ;;  %v421_v37 = vmul.f32 0.5, %v259_v40 }
  0xd8   :  { %v405_v49 = vmul.f32 0.25, %v343_v22  ;;  %v406_v54 = vmul.f32 0.25, %v315_v52  ;;  %v317_v55 = vrot.slane %v262_v34, 7  ;;  %v359_v56 = vrot.slane %v262_v34, 1 }
  0xd9   :  { %v261_v20 = vadd.f32 %v245_v47, %v229_v32  ;;  %v232_v57 = vadd.f32 %v216_v13, %v200_v45  ;;  %v248_v53 = vmul.f32 0.25, %v184_v44  ;;  %v453_v30 = vmul.f32 0.25, %v358_v29 }
  0xda   :  { %v437_v58 = vadd.f32 %v421_v37, %v405_v49  ;;  %v438_v59 = vadd.f32 %v422_v35, %v406_v54  ;;  %v166_v38 = vsel %vm151_vm0, %v656_v31, %v132_v48  ;;  %v215_v60 = vmul.f32 0.5, %v620_v15 }
  0xdb   :  { %v279_v23 = vrot.slane %v261_v20, 1  ;;  %v316_v61 = vrot.slane %v261_v20, 7  ;;  %v183_v62 = vsel %vm168_vm1, %v656_v31, %v132_v48  ;;  %v393_v26 = vsel %vm346_vm2, %v359_v56, %v317_v55 }
  0xdc   :  { %v469_v63 = vadd.f32 %v453_v30, %v437_v58  ;;  %v470_v0 = vadd.f32 %v454_v25, %v438_v59  ;;  %v264_v1 = vadd.f32 %v248_v53, %v232_v57  ;;  %v199_v5 = vmul.f32 0.25, %v166_v38 }
  0xdd   :  { %v318_v2 = vsel %vm297_vm3, %v316_v61, %v317_v55  ;;  %v344_v3 = vsel %vm297_vm3, %v279_v23, %v316_v61  ;;  %v360_v4 = vsel %vm346_vm2, %v279_v23, %v359_v56  ;;  %v424_v15 = vmul.f32 0.5, %v262_v34 }
  0xde   :  { %486 = vst.msk [vmem:[#allocation5 + $0x50] sm:$0xff] %vm475_vm4, %v469_v63  ;;  %487 = vst.msk [vmem:[#allocation5 + $0x58] sm:$0xff] %vm475_vm4, %v470_v0  ;;  %v407_v50 = vmul.f32 0.25, %v344_v3  ;;  %v408_v6 = vmul.f32 0.25, %v318_v2  ;;  %v423_v31 = vmul.f32 0.5, %v261_v20  ;;  %v231_v7 = vadd.f32 %v215_v60, %v199_v5 }
  0xdf   :  { %v247_v24 = vmul.f32 0.25, %v183_v62  ;;  %v456_v21 = vmul.f32 0.25, %v393_v26  ;;  %v455_v9 = vmul.f32 0.25, %v360_v4  ;;  %v320_v10 = vrot.slane %v264_v1, 7 }
  0xe0   :  { %v439_v39 = vadd.f32 %v423_v31, %v407_v50  ;;  %v440_v8 = vadd.f32 %v424_v15, %v408_v6  ;;  %v361_v11 = vrot.slane %v264_v1, 1  ;;  %v426_v40 = vmul.f32 0.5, %v264_v1 }
  0xe1   :  { %v263_v12 = vadd.f32 %v247_v24, %v231_v7 }
  0xe2   :  { %v471_v36 = vadd.f32 %v455_v9, %v439_v39  ;;  %v472_v13 = vadd.f32 %v456_v21, %v440_v8  ;;  %v394_v16 = vsel %vm346_vm2, %v361_v11, %v320_v10 }
  0xe3   :  { %v280_v17 = vrot.slane %v263_v12, 1  ;;  %v319_v27 = vrot.slane %v263_v12, 7  ;;  %v425_v28 = vmul.f32 0.5, %v263_v12  ;;  %v458_v14 = vmul.f32 0.25, %v394_v16 }
  0xe4   :  { %488 = vst.msk [vmem:[#allocation5 + $0x60] sm:$0xff] %vm475_vm4, %v471_v36  ;;  %489 = vst.msk [vmem:[#allocation5 + $0x68] sm:$0xff] %vm475_vm4, %v472_v13 }
  0xe5   :  { %v321_v18 = vsel %vm297_vm3, %v319_v27, %v320_v10  ;;  %v345_v19 = vsel %vm297_vm3, %v280_v17, %v319_v27  ;;  %v362_v35 = vsel %vm346_vm2, %v280_v17, %v361_v11 }
  0xe6   :  { %v409_v46 = vmul.f32 0.25, %v345_v19  ;;  %v410_v51 = vmul.f32 0.25, %v321_v18  ;;  %v457_v33 = vmul.f32 0.25, %v362_v35 }
  0xe8   :  { %v441_v41 = vadd.f32 %v425_v28, %v409_v46  ;;  %v442_v25 = vadd.f32 %v426_v40, %v410_v51 }
  0xea   :  { %v473_v42 = vadd.f32 %v457_v33, %v441_v41  ;;  %v474_v43 = vadd.f32 %v458_v14, %v442_v25 }
  0xec   :  { %490 = vst.msk [vmem:[#allocation5 + $0x70] sm:$0xff] %vm475_vm4, %v473_v42  ;;  %491 = vst.msk [vmem:[#allocation5 + $0x78] sm:$0xff] %vm475_vm4, %v474_v43 }
  0xed   :  { %548 = shalt.err (!%p545_p12)
}
  0xee   :  { %s549_s26 = scalar_lea.hbm %s818_s1, 2048 }
  0xef   :  { %p550_p13 = scmp.ne.s32.totalorder %s818_s1, %s549_s26  ;;  %p553_p0 = scmp.lt.u32.totalorder %s549_s26, %s818_s1 }
  0xf1   :  { %p555_p1 = pnand %p553_p0, %p550_p13 }
  0xf3   :  { %558 = shalt.err (!%p555_p1)
}
  0xf4   :  { %503 = dma.vmem_to_hbm [thread:$0]  %s498_s22, 2048, %s818_s1, [#allocation4], %s564_s16, %s564_s16, %s565_s17  }
  0xf5   :  { %561 = dma.done.wait [#allocation4], 2048  }
  0xf6   :  { %562 = vsyncadd [#allocation4], 4294965248 }
  0xf7   :  { %507 = vsyncpa [#allocation3], 1 }
  0xf8   :  { %508 = vsyncpa [#allocation4], 1 }

</bundles_post_ra>
